<compile_context>
chip_gen: v7x
topology: tpu7x:2x2x1
jax: 0.10.0
libtpu: 0.0.40
codegen_flags: <defaults>
</compile_context>

<pallas_src>
import functools

import jax
import jax.numpy as jnp
from jax.experimental import pallas as pl
from jax.experimental.pallas import tpu as pltpu


def _triplet_kernel(a_ref, p_ref, n_ref, loss_ref, *, margin):
    # Upcast in-kernel so sub-32-bit inputs travel HBM->VMEM at native width.
    a = a_ref[...].astype(jnp.float32)          # (TB, D)
    p = p_ref[...].astype(jnp.float32)
    n = n_ref[...].astype(jnp.float32)

    d_ap = a - p
    d_an = a - n

    # Squared L2 per row (XLU cross-lane reduce), keepdims -> (TB, 1).
    s_ap = jnp.sum(d_ap * d_ap, axis=-1, keepdims=True)
    s_an = jnp.sum(d_an * d_an, axis=-1, keepdims=True)

    # Per-sample loss written to the (TB, 1) output block (batch-tail rows of the
    # last grid step are masked out by Pallas on the store side).
    loss_ref[...] = jnp.maximum(jnp.sqrt(s_ap) - jnp.sqrt(s_an) + margin, 0.0)


def _vmem_budget():
    """Generation-aware (input double-buffer budget, scoped vmem limit) in bytes."""
    phys = None
    try:
        info = pltpu.get_tpu_info()
        phys = getattr(info, "vmem_capacity_bytes", None)
    except Exception:
        phys = None
    if phys is None:
        phys = 64 * 1024 * 1024          # conservative: v7x per-TensorCore VMEM
    if phys >= 128 * 1024 * 1024:        # v5e / v6e: 128 MiB physical VMEM
        vmem_limit = 64 << 20
        budget = 48 << 20
    else:                                # v7x (64 MiB per TC) or unknown/smaller
        vmem_limit = min(int(phys), 56 << 20)
        budget = min(40 << 20, max(vmem_limit - (8 << 20), 8 << 20))
    return budget, vmem_limit


def _round_up8(x):
    return ((x + 7) // 8) * 8


def _choose_tile_b(batch, d, itemsize, budget_bytes):
    """Largest batch tile whose double-buffered input footprint fits the budget,
    with >=2 tiles (preferably an even count) so v7x megacore gets both cores."""
    if batch <= 8:
        return batch                      # single block equal to the full batch dim

    per_row_bytes = 3 * 2 * d * itemsize  # 3 inputs x 2 pipeline buffers
    tb = max(8, (budget_bytes // per_row_bytes) // 8 * 8)
    tb = min(tb, (batch // 8) * 8)        # never a block taller than the array

    # Guarantee at least 2 tiles on the parallel axis (v7x has 2 TensorCores).
    if tb >= batch:
        tb = max(8, _round_up8(-(-batch // 2)))

    # Prefer an even tile count when it is cheap to arrange.
    nt = -(-batch // tb)
    if nt > 2 and nt % 2 == 1:
        tb_even = max(8, _round_up8(-(-batch // (nt + 1))))
        if -(-batch // tb_even) % 2 == 0:
            tb = tb_even
    return tb


def triplet_margin_loss(anchor, positive, negative, margin=1.0):
    """Pallas equivalent of triplet_margin_loss_cuda: scalar mean loss."""
    assert anchor.shape == positive.shape == negative.shape
    B, D = anchor.shape
    itemsize = jnp.dtype(anchor.dtype).itemsize

    budget, vmem_limit = _vmem_budget()
    tb = _choose_tile_b(B, D, itemsize, budget)
    num_tiles = pl.cdiv(B, tb)

    kernel = functools.partial(_triplet_kernel, margin=float(margin))

    cost = pl.CostEstimate(
        flops=6 * B * D,
        transcendentals=2 * B,
        bytes_accessed=3 * B * D * itemsize + B * 4,
    )

    per_row = pl.pallas_call(
        kernel,
        out_shape=jax.ShapeDtypeStruct((B, 1), jnp.float32),
        grid=(num_tiles,),
        in_specs=[
            pl.BlockSpec((tb, D), lambda i: (i, 0)),
            pl.BlockSpec((tb, D), lambda i: (i, 0)),
            pl.BlockSpec((tb, D), lambda i: (i, 0)),
        ],
        out_specs=pl.BlockSpec((tb, 1), lambda i: (i, 0)),
        compiler_params=pltpu.CompilerParams(
            dimension_semantics=("parallel",),
            vmem_limit_bytes=int(vmem_limit),
        ),
        cost_estimate=cost,
    )(anchor, positive, negative)

    # losses.mean() as in the CUDA reference (tiny reduction left to XLA).
    return (jnp.sum(per_row) / B).astype(anchor.dtype)


class ModelNew:
    """JAX/Pallas counterpart of the PyTorch ModelNew (triplet margin loss)."""

    def __init__(self, margin=1.0):
        self.margin = float(margin)
        self._fn = jax.jit(
            functools.partial(triplet_margin_loss, margin=self.margin)
        )

    def __call__(self, anchor, positive, negative):
        return self._fn(anchor, positive, negative)


def _reference(anchor, positive, negative, margin):
    a = anchor.astype(jnp.float32)
    p = positive.astype(jnp.float32)
    n = negative.astype(jnp.float32)
    d_ap = jnp.sqrt(jnp.sum((a - p) ** 2, axis=-1))
    d_an = jnp.sqrt(jnp.sum((a - n) ** 2, axis=-1))
    return jnp.mean(jnp.maximum(d_ap - d_an + margin, 0.0))


if __name__ == "__main__":
    key = jax.random.PRNGKey(0)
    ks = jax.random.split(key, 9)
    model = ModelNew(margin=1.0)

    # Test 1: small aligned shapes, single tile.
    B, D = 8, 64
    a = jax.random.normal(ks[0], (B, D), dtype=jnp.float32)
    p = jax.random.normal(ks[1], (B, D), dtype=jnp.float32)
    n = jax.random.normal(ks[2], (B, D), dtype=jnp.float32)
    loss = model(a, p, n)
    jax.block_until_ready(loss)
    ref = _reference(a, p, n, 1.0)
    assert jnp.allclose(loss, ref, atol=1e-5, rtol=1e-5), (loss, ref)

    # Test 2: non-aligned batch (37) and feature (200) dims -> 2-tile grid with a
    # partial tail block and a non-128-multiple feature reduction (edge masking).
    B2, D2 = 37, 200
    a2 = jax.random.normal(ks[3], (B2, D2), dtype=jnp.float32)
    p2 = jax.random.normal(ks[4], (B2, D2), dtype=jnp.float32)
    n2 = jax.random.normal(ks[5], (B2, D2), dtype=jnp.float32)
    loss2 = model(a2, p2, n2)
    jax.block_until_ready(loss2)
    ref2 = _reference(a2, p2, n2, 1.0)
    assert jnp.allclose(loss2, ref2, atol=1e-5, rtol=1e-5), (loss2, ref2)

    # Test 3: bf16 inputs streamed at native width, upcast inside the kernel.
    B3, D3 = 16, 96
    a3 = jax.random.normal(ks[6], (B3, D3), dtype=jnp.float32).astype(jnp.bfloat16)
    p3 = jax.random.normal(ks[7], (B3, D3), dtype=jnp.float32).astype(jnp.bfloat16)
    n3 = jax.random.normal(ks[8], (B3, D3), dtype=jnp.float32).astype(jnp.bfloat16)
    loss3 = model(a3, p3, n3)
    jax.block_until_ready(loss3)
    ref3 = _reference(a3, p3, n3, 1.0)
    assert jnp.allclose(loss3.astype(jnp.float32), ref3, atol=5e-2, rtol=5e-2), (
        loss3, ref3)

    print("KERNEL_OK")
</pallas_src>

<mosaic_0001>
module attributes {stable_mosaic.version = 11 : i64} {
  func.func @_triplet_kernel(%arg0: i32, %arg1: memref<8x64xf32, #tpu.memory_space<vmem>>, %arg2: memref<8x64xf32, #tpu.memory_space<vmem>>, %arg3: memref<8x64xf32, #tpu.memory_space<vmem>>, %arg4: memref<8x1xf32, #tpu.memory_space<vmem>>) attributes {dimension_semantics = [#tpu.dimension_semantics<parallel>], iteration_bounds = array<i64: 1>, scalar_prefetch = 0 : i64, scratch_operands = 0 : i64, tpu.core_type = #tpu.core_type<tc>, window_params = [{transform_indices = @transform_0, window_bounds = array<i64: 8, 64>}, {transform_indices = @transform_1, window_bounds = array<i64: 8, 64>}, {transform_indices = @transform_2, window_bounds = array<i64: 8, 64>}, {transform_indices = @transform_3, window_bounds = array<i64: 8, 1>}]} {
    %c0 = arith.constant 0 : index
    %c0_0 = arith.constant 0 : index
    %0 = vector.load %arg1[%c0, %c0_0] : memref<8x64xf32, #tpu.memory_space<vmem>>, vector<8x64xf32>
    %c0_1 = arith.constant 0 : index
    %c0_2 = arith.constant 0 : index
    %1 = vector.load %arg2[%c0_1, %c0_2] : memref<8x64xf32, #tpu.memory_space<vmem>>, vector<8x64xf32>
    %c0_3 = arith.constant 0 : index
    %c0_4 = arith.constant 0 : index
    %2 = vector.load %arg3[%c0_3, %c0_4] : memref<8x64xf32, #tpu.memory_space<vmem>>, vector<8x64xf32>
    %3 = arith.subf %0, %1 : vector<8x64xf32>
    %4 = arith.subf %0, %2 : vector<8x64xf32>
    %5 = arith.mulf %3, %3 : vector<8x64xf32>
    %cst = arith.constant dense<0.000000e+00> : vector<8xf32>
    %6 = vector.multi_reduction <add>, %5, %cst [1] : vector<8x64xf32> to vector<8xf32>
    %7 = vector.shape_cast %6 : vector<8xf32> to vector<8x1xf32>
    %8 = arith.mulf %4, %4 : vector<8x64xf32>
    %cst_5 = arith.constant dense<0.000000e+00> : vector<8xf32>
    %9 = vector.multi_reduction <add>, %8, %cst_5 [1] : vector<8x64xf32> to vector<8xf32>
    %10 = vector.shape_cast %9 : vector<8xf32> to vector<8x1xf32>
    %11 = math.sqrt %7 : vector<8x1xf32>
    %12 = math.sqrt %10 : vector<8x1xf32>
    %13 = arith.subf %11, %12 : vector<8x1xf32>
    %cst_6 = arith.constant 1.000000e+00 : f32
    %14 = vector.broadcast %cst_6 : f32 to vector<8x1xf32>
    %15 = arith.addf %13, %14 : vector<8x1xf32>
    %cst_7 = arith.constant 0.000000e+00 : f32
    %16 = vector.broadcast %cst_7 : f32 to vector<8x1xf32>
    %17 = arith.maximumf %15, %16 : vector<8x1xf32>
    %c0_8 = arith.constant 0 : index
    %c0_9 = arith.constant 0 : index
    %18 = vector.load %arg4[%c0_8, %c0_9] : memref<8x1xf32, #tpu.memory_space<vmem>>, vector<8x1xf32>
    tpu.vector_store %arg4[%c0_8, %c0_9], %17 {strides = array<i32>} : memref<8x1xf32, #tpu.memory_space<vmem>>, vector<8x1xf32>,
    return
  }
  func.func @transform_0(%arg0: i32) -> (i32, i32) {
    %c0_i32 = arith.constant 0 : i32
    %c0_i32_0 = arith.constant 0 : i32
    return %arg0, %c0_i32 : i32, i32
  }
  func.func @transform_1(%arg0: i32) -> (i32, i32) {
    %c0_i32 = arith.constant 0 : i32
    %c0_i32_0 = arith.constant 0 : i32
    return %arg0, %c0_i32 : i32, i32
  }
  func.func @transform_2(%arg0: i32) -> (i32, i32) {
    %c0_i32 = arith.constant 0 : i32
    %c0_i32_0 = arith.constant 0 : i32
    return %arg0, %c0_i32 : i32, i32
  }
  func.func @transform_3(%arg0: i32) -> (i32, i32) {
    %c0_i32 = arith.constant 0 : i32
    %c0_i32_0 = arith.constant 0 : i32
    return %arg0, %c0_i32 : i32, i32
  }
}

</mosaic_0001>

<bundles_post_ra>
// kernel: triplet_margin_loss.1
= control target key start
LH: loop header
LB: loop body
LE: loop exit
PB: predicated region body
PF: predicated region fallthrough
CT: control target
= control target key end

     0   :  { %8 = vsyncpa [#allocation3], 0  ;;  %s227_s0 = inlined_call_operand.hbm [shape: f32[8,64], index: 0, kind: input, shape index: {}]   ;;  %s228_s1 = inlined_call_operand.hbm [shape: f32[8,64], index: 1, kind: input, shape index: {}]   ;;  %s229_s2 = inlined_call_operand.hbm [shape: f32[8,64], index: 2, kind: input, shape index: {}]   ;;  %s230_s3 = inlined_call_operand.vmem [shape: f32[8,1], index: 3, kind: output, shape index: {}]  }
   0x1   :  { %9 = vsyncpa [#allocation5], 0  ;;  %s165_s12 = smov [#allocation4]   ;;  %s166_s14 = smov [#allocation2]  }
   0x2   :  { %s26_s13 = sshll.u32 %s165_s12, 4  ;;  %s16_s15 = sshll.u32 %s166_s14, 4  ;;  %s27_s13 = int_to_ptr.vmem [resolvable:$true] %s26_s13  ;;  %s17_s15 = int_to_ptr.vmem [resolvable:$true] %s16_s15 }
   0x3   :  { %s95_s18 = scalar_lea.hbm %s228_s1, 128 }
   0x4   :  { %p96_p0 = scmp.ne.s32.totalorder %s228_s1, %s95_s18  ;;  %p99_p1 = scmp.lt.u32.totalorder %s95_s18, %s228_s1 }
   0x6   :  { %p101_p2 = pnand %p99_p1, %p96_p0 }
   0x8   :  { %104 = shalt.err (!%p101_p2)
}
   0x9   :  { %s105_s23 = scalar_lea.vmem %s27_s13, 128  ;;  %p110_p4 = scmp.lt.s32.totalorder %s27_s13, %s27_s13 }
   0xa   :  { %p106_p3 = scmp.ne.s32.totalorder %s27_s13, %s105_s23  ;;  %p111_p5 = scmp.lt.s32.totalorder %s105_s23, %s105_s23 }
   0xc   :  { %p112_p6 = por %p111_p5, %p110_p4 }
   0xe   :  { %p113_p7 = pnand %p112_p6, %p106_p3 }
  0x10   :  { %116 = shalt.err (!%p113_p7)
}
  0x11   :  { %29 = dma.hbm_to_vmem [thread:$0]  %s228_s1, 128, %s27_s13, [#allocation5]  }
  0x12   :  { %s117_s28 = scalar_lea.hbm %s227_s0, 128 }
  0x13   :  { %p118_p8 = scmp.ne.s32.totalorder %s227_s0, %s117_s28  ;;  %p121_p9 = scmp.lt.u32.totalorder %s117_s28, %s227_s0 }
  0x15   :  { %p123_p10 = pnand %p121_p9, %p118_p8 }
  0x17   :  { %126 = shalt.err (!%p123_p10)
}
  0x18   :  { %s127_s6 = scalar_lea.vmem %s17_s15, 128  ;;  %p132_p12 = scmp.lt.s32.totalorder %s17_s15, %s17_s15 }
  0x19   :  { %p128_p11 = scmp.ne.s32.totalorder %s17_s15, %s127_s6  ;;  %p133_p13 = scmp.lt.s32.totalorder %s127_s6, %s127_s6 }
  0x1b   :  { %p134_p0 = por %p133_p13, %p132_p12 }
  0x1d   :  { %p135_p1 = pnand %p134_p0, %p128_p11 }
  0x1f   :  { %138 = shalt.err (!%p135_p1)
}
  0x20   :  { %19 = dma.hbm_to_vmem [thread:$0]  %s227_s0, 128, %s17_s15, [#allocation3]  }
  0x21   :  { %s167_s8 = smov [#allocation6]   ;;  %s139_s12 = scalar_lea.hbm %s229_s2, 128 }
  0x22   :  { %s36_s9 = sshll.u32 %s167_s8, 4  ;;  %p140_p2 = scmp.ne.s32.totalorder %s229_s2, %s139_s12  ;;  %s37_s9 = int_to_ptr.vmem [resolvable:$true] %s36_s9 }
  0x23   :  { %p143_p3 = scmp.lt.u32.totalorder %s139_s12, %s229_s2 }
  0x25   :  { %p145_p4 = pnand %p143_p3, %p140_p2 }
  0x27   :  { %148 = shalt.err (!%p145_p4)
}
  0x28   :  { %s149_s18 = scalar_lea.vmem %s37_s9, 128  ;;  %p154_p6 = scmp.lt.s32.totalorder %s37_s9, %s37_s9 }
  0x29   :  { %p150_p5 = scmp.ne.s32.totalorder %s37_s9, %s149_s18  ;;  %p155_p7 = scmp.lt.s32.totalorder %s149_s18, %s149_s18 }
  0x2b   :  { %p156_p8 = por %p155_p7, %p154_p6 }
  0x2d   :  { %p157_p9 = pnand %p156_p8, %p150_p5 }
  0x2f   :  { %160 = shalt.err (!%p157_p9)
}
  0x30   :  { %39 = dma.hbm_to_vmem [thread:$0]  %s229_s2, 128, %s37_s9, [#allocation5]  }
  0x31   :  { %161 = dma.done.wait [#allocation3], 128  }
  0x32   :  { %162 = vsyncadd [#allocation3], 4294967168 }
  0x33   :  { %163 = dma.done.wait [#allocation5], 256  }
  0x34   :  { %164 = vsyncadd [#allocation5], 4294967040  ;;  %v49_v0 = vld [vmem:[#allocation2] sm:$0xff]  ;;  %v50_v1 = vld [vmem:[#allocation4] sm:$0xff]  ;;  %vm55_vm0 = vcmask 523264   ;;  %vm80_vm5 = vcmask 7168  }
  0x35   :  { %v51_v2 = vld [vmem:[#allocation6] sm:$0xff]  ;;  %v52_v3 = vsub.f32 %v49_v0, %v50_v1 }
  0x36   :  { %v53_v4 = vsub.f32 %v49_v0, %v51_v2 }
  0x37   :  { %v54_v5 = vmul.f32 %v52_v3, %v52_v3 }
  0x38   :  { %v59_v6 = vmul.f32 %v53_v4, %v53_v4 }
  0x39   :  { %v56_v7 = vsel %vm55_vm0, %v54_v5, 0.0 }
  0x3a   :  { %57 = vadd.xlane.f32.xlu0 %v56_v7  ;;  %v60_v8 = vsel %vm55_vm0, %v59_v6, 0.0 }
  0x3e   :  { %61 = vadd.xlane.f32.xlu0 %v60_v8 }
  0xc7   :  { %v58_v9 = vpop.xlane.xlu0 %57 }
  0xc8   :  { %91 = vrsqrt.f32 %v58_v9  ;;  %vm65_vm1 = vcmp.eq.f32.partialorder %v58_v9, inf  ;;  %v68_v16 = vand.u32 2147483648, %v58_v9  ;;  %vm67_vm3 = vcmp.eq.f32.partialorder %v58_v9, 0.0 }
  0xcb   :  { %v62_v10 = vpop.xlane.xlu0 %61 }
  0xcc   :  { %93 = vrsqrt.f32 %v62_v10  ;;  %vm72_vm2 = vcmp.eq.f32.partialorder %v62_v10, inf  ;;  %v75_v17 = vand.u32 2147483648, %v62_v10  ;;  %vm74_vm4 = vcmp.eq.f32.partialorder %v62_v10, 0.0 }
  0xd2   :  { %v92_v11 = vpop.eup %91 }
  0xd3   :  { %v64_v12 = vmul.f32 %v92_v11, %v58_v9 }
  0xd5   :  { %v66_v14 = vsel %vm65_vm1, %v58_v9, %v64_v12 }
  0xd6   :  { %v94_v13 = vpop.eup %93  ;;  %v69_v19 = vsel %vm67_vm3, %v68_v16, %v66_v14 }
  0xd7   :  { %v71_v15 = vmul.f32 %v94_v13, %v62_v10 }
  0xd9   :  { %v73_v18 = vsel %vm72_vm2, %v62_v10, %v71_v15 }
  0xda   :  { %v76_v20 = vsel %vm74_vm4, %v75_v17, %v73_v18 }
  0xdb   :  { %v77_v21 = vsub.f32 %v69_v19, %v76_v20 }
  0xdd   :  { %v78_v22 = vadd.f32 1.0, %v77_v21 }
  0xdf   :  { %v79_v23 = vmax.f32 %v78_v22, 0.0 }
  0xe1   :  { %81 = vst.msk [vmem:[%s230_s3] sm:$0xff] %vm80_vm5, %v79_v23 }
  0xe2   :  { %86 = vsyncpa [#allocation3], 1 }
  0xe3   :  { %87 = vsyncpa [#allocation5], 1 }

</bundles_post_ra>
